<compile_context>
chip_gen: v7x
topology: tpu7x:2x2x1
jax: 0.10.0
libtpu: 0.0.40
codegen_flags: <defaults>
</compile_context>

<pallas_src>
import functools

import jax
import jax.numpy as jnp
from jax import lax
from jax.experimental import pallas as pl
from jax.experimental.pallas import tpu as pltpu


def _pick_tile(total: int, desired: int, granule: int = 8) -> int:
    """Largest multiple of `granule` that divides `total` and is <= desired.

    Falls back to `total` itself (block dim == full array dim is always legal).
    """
    t = min(desired, total)
    t = (t // granule) * granule
    while t >= granule:
        if total % t == 0:
            return t
        t -= granule
    return total


def _fused_attn_kernel(q_ref, k_ref, v_ref, e_ref, o_ref,
                       m_sc, l_sc, acc_sc, *, scale):
    # q_ref: (1, tq, D)  k_ref/v_ref: (1, tk, D)  e_ref: (tk, D)  o_ref: (1, tq, D)
    ki = pl.program_id(2)

    @pl.when(ki == 0)
    def _init():
        m_sc[...] = jnp.full_like(m_sc, -jnp.inf)
        l_sc[...] = jnp.zeros_like(l_sc)
        acc_sc[...] = jnp.zeros_like(acc_sc)

    q = q_ref[0]                               # (tq, D) bf16
    kpe = k_ref[0] + e_ref[...]                # (tk, D) keys + abs-pos emb (fused logits)

    # sim tile = scale * q @ (k + emb)^T, accumulated in f32 on the MXU.
    s = lax.dot_general(q, kpe, (((1,), (1,)), ((), ())),
                        preferred_element_type=jnp.float32) * scale   # (tq, tk)

    m_prev = m_sc[...]
    m_new = jnp.maximum(m_prev, s.max(axis=-1, keepdims=True))
    alpha = jnp.exp(m_prev - m_new)
    p = jnp.exp(s - m_new)
    l_sc[...] = alpha * l_sc[...] + p.sum(axis=-1, keepdims=True)
    acc_sc[...] = alpha * acc_sc[...] + jnp.dot(
        p.astype(v_ref.dtype), v_ref[0], preferred_element_type=jnp.float32)
    m_sc[...] = m_new

    @pl.when(ki == pl.num_programs(2) - 1)
    def _finish():
        o_ref[0] = (acc_sc[...] *
                    pl.reciprocal(l_sc[...], approx=True)).astype(o_ref.dtype)


def bottle_attention(q, k, v, height, width, *, scale,
                     tile_q: int = 512, tile_kv: int = 512,
                     compute_dtype=jnp.bfloat16):
    """Fused Attention-with-AbsPosEmb.

    q, k, v: (B, heads, I, D) with I = H*W; height: (H, D); width: (W, D).
    Returns softmax(scale * (q@k^T + q@emb^T)) @ v  with shape (B, heads, I, D).
    """
    B, NH, I, D = q.shape
    H = height.shape[0]
    W = width.shape[0]
    HW = H * W
    assert k.shape == (B, NH, HW, D) and v.shape == (B, NH, HW, D)

    # Grid-invariant absolute positional embedding, built once in plain JAX.
    emb = (height[:, None, :] + width[None, :, :]).reshape(HW, D)
    emb = emb.astype(compute_dtype)

    BHead = B * NH
    qf = q.reshape(BHead, I, D).astype(compute_dtype)
    kf = k.reshape(BHead, HW, D).astype(compute_dtype)
    vf = v.reshape(BHead, HW, D).astype(compute_dtype)

    tq = _pick_tile(I, tile_q)
    tk = _pick_tile(HW, tile_kv)
    grid = (BHead, I // tq, HW // tk)

    kernel = functools.partial(_fused_attn_kernel, scale=float(scale))

    out = pl.pallas_call(
        kernel,
        out_shape=jax.ShapeDtypeStruct((BHead, I, D), q.dtype),
        grid_spec=pl.GridSpec(
            grid=grid,
            in_specs=[
                pl.BlockSpec((1, tq, D), lambda b, qi, ki: (b, qi, 0)),  # q
                pl.BlockSpec((1, tk, D), lambda b, qi, ki: (b, ki, 0)),  # k
                pl.BlockSpec((1, tk, D), lambda b, qi, ki: (b, ki, 0)),  # v
                pl.BlockSpec((tk, D), lambda b, qi, ki: (ki, 0)),        # emb
            ],
            out_specs=pl.BlockSpec((1, tq, D), lambda b, qi, ki: (b, qi, 0)),
            scratch_shapes=[
                pltpu.VMEM((tq, 1), jnp.float32),   # running max
                pltpu.VMEM((tq, 1), jnp.float32),   # running denom
                pltpu.VMEM((tq, D), jnp.float32),   # output accumulator
            ],
        ),
        compiler_params=pltpu.CompilerParams(
            dimension_semantics=("parallel", "parallel", "arbitrary")),
    )(qf, kf, vf, emb)

    return out.reshape(B, NH, I, D)


if __name__ == "__main__":
    # Small, deterministic config: fmap_size = 8x8, dim_head = 32,
    # batch = 2, heads = 4, query length I = H*W = 64.
    fmap_size = 8
    dim_head = 32
    B, NH = 2, 4
    H = W = fmap_size
    I = H * W

    key = jax.random.PRNGKey(0)
    k_h, k_w, k_q, k_k, k_v = jax.random.split(key, 5)

    scale = dim_head ** (-0.5)
    height = jax.random.normal(k_h, (H, dim_head), dtype=jnp.float32) * scale
    width = jax.random.normal(k_w, (W, dim_head), dtype=jnp.float32) * scale
    q = jax.random.normal(k_q, (B, NH, I, dim_head), dtype=jnp.float32)
    k = jax.random.normal(k_k, (B, NH, I, dim_head), dtype=jnp.float32)
    v = jax.random.normal(k_v, (B, NH, I, dim_head), dtype=jnp.float32)

    out = jax.block_until_ready(
        bottle_attention(q, k, v, height, width, scale=scale))

    # Pure-JAX reference (inputs pre-rounded to bf16 so only the kernel's
    # arithmetic path is being compared, not the input quantization).
    def _r(x):
        return x.astype(jnp.bfloat16).astype(jnp.float32)

    emb_ref = _r((height[:, None, :] + width[None, :, :]).reshape(H * W, dim_head))
    qs = _r(q) * scale
    sim = (jnp.einsum('bhid,bhjd->bhij', qs, _r(k))
           + jnp.einsum('bhid,jd->bhij', qs, emb_ref))
    attn = jax.nn.softmax(sim, axis=-1)
    out_ref = jnp.einsum('bhij,bhjd->bhid', attn, _r(v))

    assert out.shape == (B, NH, I, dim_head), out.shape
    max_err = float(jnp.max(jnp.abs(out.astype(jnp.float32) - out_ref)))
    assert max_err < 2e-2, f"max abs err {max_err}"

    print("KERNEL_OK")
</pallas_src>

<mosaic_0001>
module attributes {stable_mosaic.version = 11 : i64} {
  func.func @_fused_attn_kernel(%arg0: i32, %arg1: i32, %arg2: i32, %arg3: memref<1x64x32xbf16, #tpu.memory_space<vmem>>, %arg4: memref<1x64x32xbf16, #tpu.memory_space<vmem>>, %arg5: memref<1x64x32xbf16, #tpu.memory_space<vmem>>, %arg6: memref<64x32xbf16, #tpu.memory_space<vmem>>, %arg7: memref<1x64x32xf32, #tpu.memory_space<vmem>>, %arg8: memref<64x1xf32, #tpu.memory_space<vmem>>, %arg9: memref<64x1xf32, #tpu.memory_space<vmem>>, %arg10: memref<64x32xf32, #tpu.memory_space<vmem>>) attributes {dimension_semantics = [#tpu.dimension_semantics<parallel>, #tpu.dimension_semantics<parallel>, #tpu.dimension_semantics<arbitrary>], iteration_bounds = array<i64: 8, 1, 1>, scalar_prefetch = 0 : i64, scratch_operands = 3 : i64, tpu.core_type = #tpu.core_type<tc>, window_params = [{transform_indices = @transform_0, window_bounds = array<i64: 1, 64, 32>}, {transform_indices = @transform_1, window_bounds = array<i64: 1, 64, 32>}, {transform_indices = @transform_2, window_bounds = array<i64: 1, 64, 32>}, {transform_indices = @transform_3, window_bounds = array<i64: 64, 32>}, {transform_indices = @transform_4, window_bounds = array<i64: 1, 64, 32>}]} {
    %c0_i32 = arith.constant 0 : i32
    %0 = arith.cmpi eq, %arg2, %c0_i32 : i32
    %1 = arith.extui %0 : i1 to i32
    %c0_i32_0 = arith.constant 0 : i32
    %2 = arith.cmpi ne, %1, %c0_i32_0 : i32
    scf.if %2 {
      %cst_29 = arith.constant 0xFF800000 : f32
      %40 = vector.broadcast %cst_29 : f32 to vector<64x1xf32>
      %c0_30 = arith.constant 0 : index
      %c0_31 = arith.constant 0 : index
      %41 = vector.load %arg8[%c0_30, %c0_31] : memref<64x1xf32, #tpu.memory_space<vmem>>, vector<64x1xf32>
      tpu.vector_store %arg8[%c0_30, %c0_31], %40 {strides = array<i32>} : memref<64x1xf32, #tpu.memory_space<vmem>>, vector<64x1xf32>,
      %cst_32 = arith.constant 0.000000e+00 : f32
      %42 = vector.broadcast %cst_32 : f32 to vector<64x1xf32>
      %c0_33 = arith.constant 0 : index
      %c0_34 = arith.constant 0 : index
      %43 = vector.load %arg9[%c0_33, %c0_34] : memref<64x1xf32, #tpu.memory_space<vmem>>, vector<64x1xf32>
      tpu.vector_store %arg9[%c0_33, %c0_34], %42 {strides = array<i32>} : memref<64x1xf32, #tpu.memory_space<vmem>>, vector<64x1xf32>,
      %cst_35 = arith.constant 0.000000e+00 : f32
      %44 = vector.broadcast %cst_35 : f32 to vector<64x32xf32>
      %c0_36 = arith.constant 0 : index
      %c0_37 = arith.constant 0 : index
      %45 = vector.load %arg10[%c0_36, %c0_37] : memref<64x32xf32, #tpu.memory_space<vmem>>, vector<64x32xf32>
      tpu.vector_store %arg10[%c0_36, %c0_37], %44 {strides = array<i32>} : memref<64x32xf32, #tpu.memory_space<vmem>>, vector<64x32xf32>,
    } else {
    }
    %c0 = arith.constant 0 : index
    %c0_1 = arith.constant 0 : index
    %c0_2 = arith.constant 0 : index
    %3 = vector.load %arg3[%c0, %c0_1, %c0_2] : memref<1x64x32xbf16, #tpu.memory_space<vmem>>, vector<1x64x32xbf16>
    %4 = vector.shape_cast %3 : vector<1x64x32xbf16> to vector<64x32xbf16>
    %c0_3 = arith.constant 0 : index
    %c0_4 = arith.constant 0 : index
    %c0_5 = arith.constant 0 : index
    %5 = vector.load %arg4[%c0_3, %c0_4, %c0_5] : memref<1x64x32xbf16, #tpu.memory_space<vmem>>, vector<1x64x32xbf16>
    %6 = vector.shape_cast %5 : vector<1x64x32xbf16> to vector<64x32xbf16>
    %c0_6 = arith.constant 0 : index
    %c0_7 = arith.constant 0 : index
    %7 = vector.load %arg6[%c0_6, %c0_7] : memref<64x32xbf16, #tpu.memory_space<vmem>>, vector<64x32xbf16>
    %8 = arith.addf %6, %7 : vector<64x32xbf16>
    %cst = arith.constant dense<0.000000e+00> : vector<64x64xf32>
    %9 = tpu.matmul %4, %8, %cst {dimension_numbers = #tpu.dot_dimension_numbers<[1], [1], [0], [0], [0, 0, 1, 0], [], []>} : vector<64x32xbf16>, vector<64x32xbf16>, vector<64x64xf32> -> vector<64x64xf32>
    %cst_8 = arith.constant 0.176776692 : f32
    %10 = vector.broadcast %cst_8 : f32 to vector<64x64xf32>
    %11 = arith.mulf %9, %10 : vector<64x64xf32>
    %c0_9 = arith.constant 0 : index
    %c0_10 = arith.constant 0 : index
    %12 = vector.load %arg8[%c0_9, %c0_10] : memref<64x1xf32, #tpu.memory_space<vmem>>, vector<64x1xf32>
    %cst_11 = arith.constant dense<0xFF800000> : vector<64xf32>
    %13 = vector.multi_reduction <maximumf>, %11, %cst_11 [1] : vector<64x64xf32> to vector<64xf32>
    %14 = vector.shape_cast %13 : vector<64xf32> to vector<64x1xf32>
    %15 = arith.maximumf %12, %14 : vector<64x1xf32>
    %16 = arith.subf %12, %15 : vector<64x1xf32>
    %17 = math.exp %16 : vector<64x1xf32>
    %18 = vector.broadcast %15 : vector<64x1xf32> to vector<64x64xf32>
    %19 = arith.subf %11, %18 : vector<64x64xf32>
    %20 = math.exp %19 : vector<64x64xf32>
    %c0_12 = arith.constant 0 : index
    %c0_13 = arith.constant 0 : index
    %21 = vector.load %arg9[%c0_12, %c0_13] : memref<64x1xf32, #tpu.memory_space<vmem>>, vector<64x1xf32>
    %22 = arith.mulf %17, %21 : vector<64x1xf32>
    %cst_14 = arith.constant dense<0.000000e+00> : vector<64xf32>
    %23 = vector.multi_reduction <add>, %20, %cst_14 [1] : vector<64x64xf32> to vector<64xf32>
    %24 = vector.shape_cast %23 : vector<64xf32> to vector<64x1xf32>
    %25 = arith.addf %22, %24 : vector<64x1xf32>
    %c0_15 = arith.constant 0 : index
    %c0_16 = arith.constant 0 : index
    %26 = vector.load %arg9[%c0_15, %c0_16] : memref<64x1xf32, #tpu.memory_space<vmem>>, vector<64x1xf32>
    tpu.vector_store %arg9[%c0_15, %c0_16], %25 {strides = array<i32>} : memref<64x1xf32, #tpu.memory_space<vmem>>, vector<64x1xf32>,
    %c0_17 = arith.constant 0 : index
    %c0_18 = arith.constant 0 : index
    %27 = vector.load %arg10[%c0_17, %c0_18] : memref<64x32xf32, #tpu.memory_space<vmem>>, vector<64x32xf32>
    %28 = vector.broadcast %17 : vector<64x1xf32> to vector<64x32xf32>
    %29 = arith.mulf %28, %27 : vector<64x32xf32>
    %30 = arith.truncf %20 : vector<64x64xf32> to vector<64x64xbf16>
    %c0_19 = arith.constant 0 : index
    %c0_20 = arith.constant 0 : index
    %c0_21 = arith.constant 0 : index
    %31 = vector.load %arg5[%c0_19, %c0_20, %c0_21] : memref<1x64x32xbf16, #tpu.memory_space<vmem>>, vector<1x64x32xbf16>
    %32 = vector.shape_cast %31 : vector<1x64x32xbf16> to vector<64x32xbf16>
    %cst_22 = arith.constant dense<0.000000e+00> : vector<64x32xf32>
    %33 = tpu.matmul %30, %32, %cst_22 {dimension_numbers = #tpu.dot_dimension_numbers<[1], [0], [0], [1], [0, 0, 1, 1], [], []>} : vector<64x64xbf16>, vector<64x32xbf16>, vector<64x32xf32> -> vector<64x32xf32>
    %34 = arith.addf %29, %33 : vector<64x32xf32>
    %c0_23 = arith.constant 0 : index
    %c0_24 = arith.constant 0 : index
    %35 = vector.load %arg10[%c0_23, %c0_24] : memref<64x32xf32, #tpu.memory_space<vmem>>, vector<64x32xf32>
    tpu.vector_store %arg10[%c0_23, %c0_24], %34 {strides = array<i32>} : memref<64x32xf32, #tpu.memory_space<vmem>>, vector<64x32xf32>,
    %c0_25 = arith.constant 0 : index
    %c0_26 = arith.constant 0 : index
    %36 = vector.load %arg8[%c0_25, %c0_26] : memref<64x1xf32, #tpu.memory_space<vmem>>, vector<64x1xf32>
    tpu.vector_store %arg8[%c0_25, %c0_26], %15 {strides = array<i32>} : memref<64x1xf32, #tpu.memory_space<vmem>>, vector<64x1xf32>,
    %c0_i32_27 = arith.constant 0 : i32
    %37 = arith.cmpi eq, %arg2, %c0_i32_27 : i32
    %38 = arith.extui %37 : i1 to i32
    %c0_i32_28 = arith.constant 0 : i32
    %39 = arith.cmpi ne, %38, %c0_i32_28 : i32
    scf.if %39 {
      %c0_29 = arith.constant 0 : index
      %c0_30 = arith.constant 0 : index
      %40 = vector.load %arg10[%c0_29, %c0_30] : memref<64x32xf32, #tpu.memory_space<vmem>>, vector<64x32xf32>
      %c0_31 = arith.constant 0 : index
      %c0_32 = arith.constant 0 : index
      %41 = vector.load %arg9[%c0_31, %c0_32] : memref<64x1xf32, #tpu.memory_space<vmem>>, vector<64x1xf32>
      %42 = tpu.reciprocal %41 {approx = true} : vector<64x1xf32> -> vector<64x1xf32>
      %43 = vector.broadcast %42 : vector<64x1xf32> to vector<64x32xf32>
      %44 = arith.mulf %40, %43 : vector<64x32xf32>
      %c0_33 = arith.constant 0 : index
      %c0_34 = arith.constant 0 : index
      %c0_35 = arith.constant 0 : index
      %45 = vector.load %arg7[%c0_33, %c0_34, %c0_35] : memref<1x64x32xf32, #tpu.memory_space<vmem>>, vector<1x64x32xf32>
      %46 = vector.shape_cast %45 : vector<1x64x32xf32> to vector<64x32xf32>
      %47 = vector.shape_cast %44 : vector<64x32xf32> to vector<1x64x32xf32>
      tpu.vector_store %arg7[%c0_33, %c0_34, %c0_35], %47 {strides = array<i32>} : memref<1x64x32xf32, #tpu.memory_space<vmem>>, vector<1x64x32xf32>,
    } else {
    }
    return
  }
  func.func @transform_0(%arg0: i32, %arg1: i32, %arg2: i32) -> (i32, i32, i32) {
    %c0_i32 = arith.constant 0 : i32
    %c0_i32_0 = arith.constant 0 : i32
    return %arg0, %arg1, %c0_i32 : i32, i32, i32
  }
  func.func @transform_1(%arg0: i32, %arg1: i32, %arg2: i32) -> (i32, i32, i32) {
    %c0_i32 = arith.constant 0 : i32
    %c0_i32_0 = arith.constant 0 : i32
    return %arg0, %arg2, %c0_i32 : i32, i32, i32
  }
  func.func @transform_2(%arg0: i32, %arg1: i32, %arg2: i32) -> (i32, i32, i32) {
    %c0_i32 = arith.constant 0 : i32
    %c0_i32_0 = arith.constant 0 : i32
    return %arg0, %arg2, %c0_i32 : i32, i32, i32
  }
  func.func @transform_3(%arg0: i32, %arg1: i32, %arg2: i32) -> (i32, i32) {
    %c0_i32 = arith.constant 0 : i32
    %c0_i32_0 = arith.constant 0 : i32
    return %arg2, %c0_i32 : i32, i32
  }
  func.func @transform_4(%arg0: i32, %arg1: i32, %arg2: i32) -> (i32, i32, i32) {
    %c0_i32 = arith.constant 0 : i32
    %c0_i32_0 = arith.constant 0 : i32
    return %arg0, %arg1, %c0_i32 : i32, i32, i32
  }
}

</mosaic_0001>

<bundles_post_ra>
// kernel: tpu_custom_call.1
= control target key start
LH: loop header
LB: loop body
LE: loop exit
PB: predicated region body
PF: predicated region fallthrough
CT: control target
= control target key end

     0   :  { %s1371_s15 = smov 0   ;;  %s1373_s16 = smov 0   ;;  %s1675_s0 = inlined_call_operand.vmem [shape: bf16[8,64,32], index: 0, kind: input, shape index: {}]   ;;  %s1676_s1 = inlined_call_operand.vmem [shape: bf16[8,64,32], index: 1, kind: input, shape index: {}]   ;;  %s1677_s2 = inlined_call_operand.vmem [shape: bf16[8,64,32], index: 2, kind: input, shape index: {}]   ;;  %s1678_s3 = inlined_call_operand.vmem [shape: bf16[64,32], index: 3, kind: input, shape index: {}]   ;;  %s1679_s4 = inlined_call_operand.vmem [shape: f32[8,64,32], index: 4, kind: output, shape index: {}]  }
   0x1   :  { %s1375_s17 = smov 0  }
   0x2 LB: > { %s33_s18 = sadd.s32 1, %s1337_s16  ;;  %p1147_p0 = scmp.ge.s32.totalorder %s1341_s17, 1  ;;  %s1341_s17 = sphi %s1375_s17, %s14_s17   ;;  %s1337_s16 = sphi %s1373_s16, %s1681_s16   ;;  %s1333_s15 = sphi %s1371_s15, %s1680_s15  }
   0x3   : > { %p35_p1 = scmp.ge.s32.totalorder %s33_s18, 8  ;;  %p235_p2 = scmp.lt.s32.totalorder %s1341_s17, 9 }
   0x5   : > { %s1683_s18 = smov (%p35_p1, %s33_s18), 0  ;;  %p236_p3 = pnand %p1147_p0, %p235_p2 }
   0x6   : > { %p293_p4 = scmp.lt.s32.totalorder (!%p236_p3), %s1333_s15, 7  ;;  %v385_v0 = vld [vmem:[%s1678_s3] sm:$0xf] (!%p236_p3)  ;;  %v386_v1 = vld [vmem:[%s1678_s3 + $0x4] sm:$0xf] (!%p236_p3)  ;;  %vm360_vm0 = vcmask (!%p236_p3), 261120  }
   0x7   : > { %239 = sbr.rel (%p236_p3) target bundleno = 877 (0x36d), region = 36  ;;  %v387_v2 = vld [vmem:[%s1678_s3 + $0x8] sm:$0xf] (!%p236_p3)  ;;  %v388_v3 = vld [vmem:[%s1678_s3 + $0xc] sm:$0xf] (!%p236_p3)  ;;  %vm343_vm1 = vcmask (!%p236_p3), 7168  }
   0x8   : > { %v389_v13 = vld [vmem:[%s1678_s3 + $0x10] sm:$0xf] (!%p236_p3)  ;;  %v390_v14 = vld [vmem:[%s1678_s3 + $0x14] sm:$0xf] (!%p236_p3)  ;;  %v391_v24 = vld [vmem:[%s1678_s3 + $0x18] sm:$0xf] (!%p236_p3) }
   0x9   : > { %v392_v27 = vld [vmem:[%s1678_s3 + $0x1c] sm:$0xf] (!%p236_p3)  ;;  %v1343_v36 = vmov (!%p236_p3), -inf   ;;  %vm547_vm2 = vcmask (!%p236_p3), 523264   ;;  %v1344_v61 = vmov (!%p236_p3), 0   ;;  %v1345_v62 = vmov (!%p236_p3), 0.0  }
   0xa   : > { %346 = vst.msk [vmem:[#allocation2 + $0x10] sm:$0xff] (!%p236_p3), %vm343_vm1, %v1343_v36  ;;  %344 = vst.msk [vmem:[#allocation2] sm:$0xff] (!%p236_p3), %vm343_vm1, %v1343_v36  ;;  %1261 = vset.pattern.permute.xlu0 (!%p236_p3), %v1344_v61  ;;  %1262 = vset.pattern.permute.xlu1 (!%p236_p3), %v1344_v61 }
   0xb   : > { %345 = vst.msk [vmem:[#allocation2 + $0x8] sm:$0xff] (!%p236_p3), %vm343_vm1, %v1343_v36  ;;  %347 = vst.msk [vmem:[#allocation2 + $0x18] sm:$0xff] (!%p236_p3), %vm343_vm1, %v1343_v36 }
   0xc   : > { %348 = vst.msk [vmem:[#allocation2 + $0x20] sm:$0xff] (!%p236_p3), %vm343_vm1, %v1343_v36  ;;  %349 = vst.msk [vmem:[#allocation2 + $0x28] sm:$0xff] (!%p236_p3), %vm343_vm1, %v1343_v36 }
   0xd   : > { %350 = vst.msk [vmem:[#allocation2 + $0x30] sm:$0xff] (!%p236_p3), %vm343_vm1, %v1343_v36  ;;  %351 = vst.msk [vmem:[#allocation2 + $0x38] sm:$0xff] (!%p236_p3), %vm343_vm1, %v1343_v36 }
   0xe   : > { %s1685_s15 = smov (!%p293_p4, %s1333_s15), 7  ;;  %354 = vst.msk [vmem:[#allocation3 + $0x10] sm:$0xff] %vm343_vm1, %v1345_v62  ;;  %352 = vst.msk [vmem:[#allocation3] sm:$0xff] %vm343_vm1, %v1345_v62 }
   0xf   : > { %s1395_s21 = sshll.u32 %s1685_s15, 5  ;;  %353 = vst.msk [vmem:[#allocation3 + $0x8] sm:$0xff] %vm343_vm1, %v1345_v62  ;;  %355 = vst.msk [vmem:[#allocation3 + $0x18] sm:$0xff] %vm343_vm1, %v1345_v62 }
  0x10   : > { %s310_s28 = scalar_lea.vmem %s1676_s1, %s1395_s21  ;;  %s1414_s7 = scalar_lea.vmem %s1675_s0, %s1395_s21  ;;  %356 = vst.msk [vmem:[#allocation3 + $0x20] sm:$0xff] %vm343_vm1, %v1345_v62  ;;  %357 = vst.msk [vmem:[#allocation3 + $0x28] sm:$0xff] %vm343_vm1, %v1345_v62 }
  0x11   : > { %v377_v4 = vld [vmem:[%s310_s28] sm:$0xf]  ;;  %v378_v5 = vld [vmem:[%s310_s28 + $0x4] sm:$0xf]  ;;  %v379_v6 = vld [vmem:[%s310_s28 + $0x8] sm:$0xf]  ;;  %s320_s23 = scalar_lea.vmem %s1677_s2, %s1395_s21 }
  0x12   : > { %v393_v7 = vadd.bf16 %v385_v0, %v377_v4  ;;  %v394_v8 = vadd.bf16 %v386_v1, %v378_v5  ;;  %v380_v9 = vld [vmem:[%s310_s28 + $0xc] sm:$0xf]  ;;  %v395_v10 = vadd.bf16 %v387_v2, %v379_v6  ;;  %v381_v12 = vld [vmem:[%s310_s28 + $0x10] sm:$0xf]  ;;  %v1263_v16 = vld [vmem:[%s1414_s7] sm:$0xff]   ;;  %358 = vst.msk [vmem:[#allocation3 + $0x30] sm:$0xff] %vm343_vm1, %v1345_v62 }
  0x13   : > { %v396_v11 = vadd.bf16 %v388_v3, %v380_v9  ;;  %v382_v18 = vld [vmem:[%s310_s28 + $0x14] sm:$0xf]  ;;  %1206 = vmatprep.mubr.msk.bf16.mxu0 %vm360_vm0, %v1263_v16  ;;  %v397_v20 = vadd.bf16 %v389_v13, %v381_v12  ;;  %v383_v25 = vld [vmem:[%s310_s28 + $0x18] sm:$0xf]  ;;  %v384_v26 = vld [vmem:[%s310_s28 + $0x1c] sm:$0xf] }
  0x14   : > { %v1160_v15 = vcombine.low %v393_v7, %v394_v8  ;;  %v398_v21 = vadd.bf16 %v390_v14, %v382_v18  ;;  %v399_v28 = vadd.bf16 %v391_v24, %v383_v25  ;;  %v400_v29 = vadd.bf16 %v392_v27, %v384_v26  ;;  %v1264_v33 = vld [vmem:[%s1414_s7 + $0x8] sm:$0xff]   ;;  %v1265_v34 = vld [vmem:[%s1414_s7 + $0x10] sm:$0xff]   ;;  %v1266_v35 = vld [vmem:[%s1414_s7 + $0x18] sm:$0xff]   ;;  %359 = vst.msk [vmem:[#allocation3 + $0x38] sm:$0xff] %vm343_vm1, %v1345_v62  ;;  %s1181_s21 = sshll.u32 %s1685_s15, 6 }
  0x15   : > { %v1161_v17 = vcombine.low %v395_v10, %v396_v11  ;;  %361 = vst.msk [vmem:[#allocation4] sm:$0xff] %vm360_vm0, %v1345_v62  ;;  %362 = vst.msk [vmem:[#allocation4 + $0x8] sm:$0xff] %vm360_vm0, %v1345_v62  ;;  %v1500_v63 = vld [vmem:[#allocation2 + $0x10] sm:$0xff]  ;;  %v1502_v0 = vld [vmem:[#allocation2] sm:$0xff]  ;;  %s1648_s26 = scalar_lea.vmem %s1679_s4, %s1181_s21 }
  0x16   : > { %1230 = vmatprep.subr.msk.bf16.mxu0 %vm360_vm0, %v1160_v15  ;;  %v455_v19 = vsel %vm360_vm0, %v1160_v15, 0  ;;  %v1162_v23 = vcombine.low %v397_v20, %v398_v21  ;;  %v1163_v31 = vcombine.low %v399_v28, %v400_v29  ;;  %363 = vst.msk [vmem:[#allocation4 + $0x10] sm:$0xff] %vm360_vm0, %v1345_v62  ;;  %364 = vst.msk [vmem:[#allocation4 + $0x18] sm:$0xff] %vm360_vm0, %v1345_v62  ;;  %v1510_v5 = vld [vmem:[#allocation2 + $0x18] sm:$0xff]  ;;  %v1517_v7 = vld [vmem:[#allocation2 + $0x8] sm:$0xff] }
  0x17   : > { %1199 = vmatpush3.bf16.xpose.msra.mxu0 %v455_v19  ;;  %v458_v22 = vsel %vm360_vm0, %v1161_v17, 0  ;;  %365 = vst.msk [vmem:[#allocation4 + $0x20] sm:$0xff] %vm360_vm0, %v1345_v62  ;;  %366 = vst.msk [vmem:[#allocation4 + $0x28] sm:$0xff] %vm360_vm0, %v1345_v62  ;;  %v1535_v14 = vld [vmem:[#allocation2 + $0x20] sm:$0xff]  ;;  %v1546_v19 = vld [vmem:[#allocation2 + $0x30] sm:$0xff] }
  0x18   : > { %1231 = vmatprep.subr.msk.bf16.mxu0 %vm360_vm0, %v1161_v17  ;;  %v461_v30 = vsel %vm360_vm0, %v1162_v23, 0  ;;  %v464_v32 = vsel %vm360_vm0, %v1163_v31, 0  ;;  %367 = vst.msk [vmem:[#allocation4 + $0x30] sm:$0xff] %vm360_vm0, %v1345_v62  ;;  %368 = vst.msk [vmem:[#allocation4 + $0x38] sm:$0xff] %vm360_vm0, %v1345_v62  ;;  %v1541_v17 = vld [vmem:[#allocation2 + $0x28] sm:$0xff]  ;;  %v1553_v21 = vld [vmem:[#allocation2 + $0x38] sm:$0xff] }
  0x19   : > { %v1268_v29 = vld [vmem:[%s320_s23 + $0x8] sm:$0xff]  }
  0x1f   : > { %1201 = vmatpush3.bf16.xpose.msra.mxu0 %v458_v22  ;;  %v1267_v22 = vld [vmem:[%s320_s23] sm:$0xff]  }
  0x20   : > { %1232 = vmatprep.subr.msk.bf16.mxu0 %vm360_vm0, %v1162_v23  ;;  %1214 = vmatprep.subr.bf16.mxu1 %v1267_v22 }
  0x21   : > { %1215 = vmatpush3.bf16.msra.mxu1 %v1267_v22 }
  0x22   : > { %1216 = vmatprep.subr.bf16.mxu1 %v1268_v29 }
  0x25   : > { %1217 = vmatpush3.bf16.msra.mxu1 %v1268_v29 }
  0x27   : > { %1203 = vmatpush3.bf16.xpose.msra.mxu0 %v461_v30 }
  0x28   : > { %1233 = vmatprep.subr.msk.bf16.mxu0 %vm360_vm0, %v1163_v31 }
  0x2f   : > { %1205 = vmatpush3.bf16.xpose.msra.mxu0 %v464_v32 }
  0x36   : > { %1207 = vmatmul.mubr.msk.bf16.vlgmr.msra.gmra.mrb[0].mxu0 %vm360_vm0, %v1264_v33  ;;  %v1269_v33 = vld [vmem:[%s320_s23 + $0x10] sm:$0xff]  }
  0x37   : > { %1210 = vmatprep.mubr.msk.bf16.mxu0 %vm360_vm0, %v1265_v34  ;;  %1218 = vmatprep.subr.bf16.mxu1 %v1269_v33  ;;  %v1270_v34 = vld [vmem:[%s320_s23 + $0x18] sm:$0xff]  }
  0x38   : > { %1219 = vmatpush3.bf16.msra.mxu1 %v1269_v33 }
  0x39   : > { %1220 = vmatprep.subr.bf16.mxu1 %v1270_v34 }
  0x3c   : > { %1221 = vmatpush3.bf16.msra.mxu1 %v1270_v34 }
  0x3e   : > { %1211 = vmatmul.mubr.msk.bf16.gmra.mrb[4].mxu0 %vm360_vm0, %v1266_v35 }
 0x109   : > { %v1208_v37 = vpop.f32.mrb[0].mxu0 }
 0x10a   : > { %v1452_v38 = vmul.f32 0.17677669, %v1208_v37  ;;  %v500_v39 = vpop.f32.mrb[1].mxu0 }
 0x10b   : > { %v1454_v40 = vmul.f32 0.17677669, %v500_v39  ;;  %v1209_v41 = vpop.f32.mrb[2].mxu0 }
 0x10c   : > { %v1456_v42 = vmul.f32 0.17677669, %v1209_v41  ;;  %v503_v43 = vpop.f32.mrb[3].mxu0  ;;  %v554_v44 = vsel %vm547_vm2, %v1452_v38, -inf }
 0x10d   : > { %v1460_v45 = vmul.f32 0.17677669, %v503_v43  ;;  %555 = vmax.xlane.f32.xlu1 %v554_v44  ;;  %v548_v46 = vsel %vm547_vm2, %v1454_v40, -inf }
 0x10e   : > { %549 = vmax.xlane.f32.xlu0 %v548_v46  ;;  %v557_v47 = vsel %vm547_vm2, %v1456_v42, -inf }
 0x10f   : > { %v551_v49 = vsel %vm547_vm2, %v1460_v45, -inf }
 0x111   : > { %558 = vmax.xlane.f32.xlu1 %v557_v47  ;;  %v1212_v48 = vpop.f32.mrb[4].mxu0 }
 0x112   : > { %552 = vmax.xlane.f32.xlu0 %v551_v49  ;;  %v516_v50 = vpop.f32.mrb[5].mxu0  ;;  %v1470_v54 = vmul.f32 0.17677669, %v1212_v48 }
 0x113   : > { %v1468_v51 = vmul.f32 0.17677669, %v516_v50  ;;  %v1213_v52 = vpop.f32.mrb[6].mxu0 }
 0x114   : > { %v519_v53 = vpop.f32.mrb[7].mxu0  ;;  %v1476_v57 = vmul.f32 0.17677669, %v1213_v52  ;;  %v566_v59 = vsel %vm547_vm2, %v1470_v54, -inf }
 0x115   : > { %v1472_v55 = vmul.f32 0.17677669, %v519_v53  ;;  %v560_v56 = vsel %vm547_vm2, %v1468_v51, -inf }
 0x116   : > { %561 = vmax.xlane.f32.xlu0 %v560_v56  ;;  %v569_v60 = vsel %vm547_vm2, %v1476_v57, -inf }
 0x117   : > { %v563_v58 = vsel %vm547_vm2, %v1472_v55, -inf }
 0x118   : > { %564 = vmax.xlane.f32.xlu1 %v563_v58 }
 0x11a   : > { %567 = vmax.xlane.f32.xlu0 %v566_v59 }
 0x11c   : > { %570 = vmax.xlane.f32.xlu1 %v569_v60 }
 0x19a   : > { %v556_v1 = vpop.xlane.xlu1 %555 }
 0x19b   : > { %v1505_v2 = vmax.f32 %v1500_v63, %v556_v1  ;;  %v550_v3 = vpop.xlane.xlu0 %549 }
 0x19c   : > { %v1508_v4 = vmax.f32 %v1502_v0, %v550_v3 }
 0x19d   : > { %v582_v6 = vsub.f32 %v1500_v63, %v1505_v2  ;;  %912 = vst.msk [vmem:[#allocation2 + $0x10] sm:$0xff] %vm343_vm1, %v1505_v2  ;;  %616 = vperm.xlu1 %1262, %v1505_v2  }
 0x19e   : > { %v580_v8 = vsub.f32 %v1502_v0, %v1508_v4  ;;  %910 = vst.msk [vmem:[#allocation2] sm:$0xff] %vm343_vm1, %v1508_v4  ;;  %v559_v9 = vpop.xlane.xlu1 %558  ;;  %606 = vperm.xlu0 %1261, %v1508_v4  }
 0x19f   : > { %v1525_v10 = vmax.f32 %v1510_v5, %v559_v9  ;;  %v553_v11 = vpop.xlane.xlu0 %552 }
 0x1a0   : > { %v1528_v12 = vmax.f32 %v1517_v7, %v553_v11 }
 0x1a1   : > { %v583_v13 = vsub.f32 %v1510_v5, %v1525_v10  ;;  %913 = vst.msk [vmem:[#allocation2 + $0x18] sm:$0xff] %vm343_vm1, %v1525_v10  ;;  %621 = vperm.xlu1 %1262, %v1525_v10  }
 0x1a2   : > { %v581_v15 = vsub.f32 %v1517_v7, %v1528_v12  ;;  %911 = vst.msk [vmem:[#allocation2 + $0x8] sm:$0xff] %vm343_vm1, %v1528_v12 }
 0x1a3   : > { %v562_v16 = vpop.xlane.xlu0 %561 }
 0x1a4   : > { %v1544_v18 = vmax.f32 %v1535_v14, %v562_v16 }
 0x1a5   : > { %611 = vperm.xlu1 %1262, %v1528_v12   ;;  %v565_v20 = vpop.xlane.xlu1 %564 }
 0x1a6   : > { %v584_v23 = vsub.f32 %v1535_v14, %v1544_v18  ;;  %914 = vst.msk [vmem:[#allocation2 + $0x20] sm:$0xff] %vm343_vm1, %v1544_v18  ;;  %v1560_v24 = vmax.f32 %v1541_v17, %v565_v20 }
 0x1a7   : > { %v568_v25 = vpop.xlane.xlu0 %567 }
 0x1a8   : > { %v585_v26 = vsub.f32 %v1541_v17, %v1560_v24  ;;  %915 = vst.msk [vmem:[#allocation2 + $0x28] sm:$0xff] %vm343_vm1, %v1560_v24  ;;  %v1567_v27 = vmax.f32 %v1546_v19, %v568_v25  ;;  %v596_v7 = vmul.f32 1.442695, %v584_v23  ;;  %v668_v17 = vld [vmem:[#allocation3] sm:$0xff] }
 0x1a9   : > { %v571_v28 = vpop.xlane.xlu1 %570 }
 0x1aa   : > { %v586_v30 = vsub.f32 %v1546_v19, %v1567_v27  ;;  %916 = vst.msk [vmem:[#allocation2 + $0x30] sm:$0xff] %vm343_vm1, %v1567_v27  ;;  %v1574_v31 = vmax.f32 %v1553_v21, %v571_v28  ;;  %636 = vperm.xlu1 %1262, %v1567_v27   ;;  %v598_v0 = vmul.f32 1.442695, %v585_v26  ;;  %v671_v26 = vld [vmem:[#allocation3 + $0x18] sm:$0xff] }
 0x1ac   : > { %v587_v32 = vsub.f32 %v1553_v21, %v1574_v31  ;;  %917 = vst.msk [vmem:[#allocation2 + $0x38] sm:$0xff] %vm343_vm1, %v1574_v31  ;;  %v600_v63 = vmul.f32 1.442695, %v586_v30 }
 0x1ae   : > { %626 = vperm.xlu1 %1262, %v1544_v18   ;;  %v602_v2 = vmul.f32 1.442695, %v587_v32 }
 0x1b2   : > { %631 = vperm.xlu1 %1262, %v1560_v24  }
 0x1b6   : > { %641 = vperm.xlu1 %1262, %v1574_v31   ;;  %v669_v31 = vld [vmem:[#allocation3 + $0x8] sm:$0xff] }
 0x21c   : > { %v617_v35 = vpop.permute.xlu1 %616 }
 0x21d   : > { %v646_v36 = vsub.f32 %v1452_v38, %v617_v35  ;;  %v607_v37 = vpop.permute.xlu0 %606 }
 0x21e   : > { %v644_v39 = vsub.f32 %v1454_v40, %v607_v37 }
 0x21f   : > { %v656_v41 = vmul.f32 1.442695, %v646_v36 }
 0x220   : > { %v652_v43 = vmul.f32 1.442695, %v644_v39  ;;  %v622_v44 = vpop.permute.xlu1 %621 }
 0x221   : > { %1271 = vpow2.f32 %v656_v41  ;;  %v647_v46 = vsub.f32 %v1456_v42, %v622_v44  ;;  %v590_v41 = vmul.f32 1.442695, %v581_v15  ;;  %v592_v44 = vmul.f32 1.442695, %v582_v6  ;;  %v670_v15 = vld [vmem:[#allocation3 + $0x10] sm:$0xff] }
 0x222   : > { %1273 = vpow2.f32 %v652_v43  ;;  %v588_v43 = vmul.f32 1.442695, %v580_v8 }
 0x223   : > { %v658_v47 = vmul.f32 1.442695, %v647_v46  ;;  %v594_v46 = vmul.f32 1.442695, %v583_v13 }
 0x224   : > { %v612_v48 = vpop.permute.xlu1 %611 }
 0x225   : > { %1275 = vpow2.f32 %v658_v47  ;;  %v645_v49 = vsub.f32 %v1460_v45, %v612_v48 }
 0x227   : > { %v654_v50 = vmul.f32 1.442695, %v645_v49 }
 0x229   : > { %1277 = vpow2.f32 %v654_v50  ;;  %v637_v52 = vpop.permute.xlu1 %636 }
 0x22a   : > { %v650_v56 = vsub.f32 %v1470_v54, %v637_v52 }
 0x22b   : > { %v1272_v53 = vpop.eup %1271 }
 0x22c   : > { %v1274_v38 = vpop.eup %1273  ;;  %v690_v40 = vsel %vm547_vm2, %v1272_v53, 0.0  ;;  %v664_v61 = vmul.f32 1.442695, %v650_v56 }
 0x22d   : > { %691 = vadd.xlane.f32.xlu0 %v690_v40  ;;  %v627_v58 = vpop.permute.xlu1 %626  ;;  %v684_v59 = vsel %vm547_vm2, %v1274_v38, 0.0 }
 0x22e   : > { %v648_v42 = vsub.f32 %v1468_v51, %v627_v58  ;;  %685 = vadd.xlane.f32.xlu1 %v684_v59  ;;  %v674_v59 = vld [vmem:[#allocation3 + $0x30] sm:$0xff] }
 0x22f   : > { %v1276_v60 = vpop.eup %1275 }
 0x230   : > { %v660_v62 = vmul.f32 1.442695, %v648_v42  ;;  %v693_v45 = vsel %vm547_vm2, %v1276_v60, 0.0  ;;  %v782_v51 = vpack.c.bf16 %v1276_v60, %v1272_v53  ;;  %v673_v42 = vld [vmem:[#allocation3 + $0x28] sm:$0xff] }
 0x231   : > { %v632_v1 = vpop.permute.xlu1 %631 }
 0x232   : > { %1279 = vpow2.f32 %v660_v62  ;;  %v649_v3 = vsub.f32 %v1472_v55, %v632_v1  ;;  %694 = vadd.xlane.f32.xlu1 %v693_v45 }
 0x233   : > { %v1278_v54 = vpop.eup %1277  ;;  %1281 = vpow2.f32 %v664_v61 }
 0x234   : > { %v662_v9 = vmul.f32 1.442695, %v649_v3  ;;  %v687_v11 = vsel %vm547_vm2, %v1278_v54, 0.0  ;;  %v781_v16 = vpack.c.bf16 %v1278_v54, %v1274_v38  ;;  %v672_v38 = vld [vmem:[#allocation3 + $0x20] sm:$0xff] }
 0x235   : > { %688 = vadd.xlane.f32.xlu0 %v687_v11  ;;  %v642_v20 = vpop.permute.xlu1 %641 }
 0x236   : > { %1283 = vpow2.f32 %v662_v9  ;;  %v651_v22 = vsub.f32 %v1476_v57, %v642_v20  ;;  %1222 = vmatprep.mubr.msk.bf16.mxu1 %vm547_vm2, %v781_v16  ;;  %v675_v9 = vld [vmem:[#allocation3 + $0x38] sm:$0xff] }
 0x237   : > { %1223 = vmatmul.mubr.msk.bf16.vlgmr.msra.gmra.mrb[0].mxu1 %vm547_vm2, %v782_v51 }
 0x238   : > { %v666_v25 = vmul.f32 1.442695, %v651_v22 }
 0x23a   : > { %1285 = vpow2.f32 %v666_v25 }
 0x23b   : > { %1287 = vpow2.f32 %v590_v41 }
 0x23c   : > { %v1280_v55 = vpop.eup %1279  ;;  %1289 = vpow2.f32 %v588_v43 }
 0x23d   : > { %v696_v28 = vsel %vm547_vm2, %v1280_v55, 0.0  ;;  %v1282_v29 = vpop.eup %1281  ;;  %1291 = vpow2.f32 %v592_v44  ;;  %v727_v44 = vld [vmem:[#allocation4 + $0x10] sm:$0xff] }
 0x23e   : > { %697 = vadd.xlane.f32.xlu0 %v696_v28  ;;  %v702_v34 = vsel %vm547_vm2, %v1282_v29, 0.0  ;;  %1293 = vpow2.f32 %v594_v46 }
 0x23f   : > { %1295 = vpow2.f32 %v596_v7  ;;  %v725_v7 = vld [vmem:[#allocation4] sm:$0xff] }
 0x240   : > { %v1284_v33 = vpop.eup %1283  ;;  %1297 = vpow2.f32 %v598_v0  ;;  %v728_v0 = vld [vmem:[#allocation4 + $0x18] sm:$0xff] }
 0x241   : > { %v699_v35 = vsel %vm547_vm2, %v1284_v33, 0.0  ;;  %v783_v36 = vpack.c.bf16 %v1284_v33, %v1280_v55  ;;  %1299 = vpow2.f32 %v600_v63 }
 0x242   : > { %703 = vadd.xlane.f32.xlu0 %v702_v34  ;;  %700 = vadd.xlane.f32.xlu1 %v699_v35  ;;  %1301 = vpow2.f32 %v602_v2  ;;  %v726_v2 = vld [vmem:[#allocation4 + $0x8] sm:$0xff] }
 0x243   : > { %1226 = vmatprep.mubr.msk.bf16.mxu1 %vm547_vm2, %v783_v36 }
 0x244   : > { %v1286_v57 = vpop.eup %1285 }
 0x245   : > { %v705_v37 = vsel %vm547_vm2, %v1286_v57, 0.0  ;;  %v784_v39 = vpack.c.bf16 %v1286_v57, %v1282_v29  ;;  %v1288_v4 = vpop.eup %1287 }
 0x246   : > { %706 = vadd.xlane.f32.xlu1 %v705_v37  ;;  %v1290_v5 = vpop.eup %1289  ;;  %v677_v48 = vmul.f32 %v1288_v4, %v669_v31 }
 0x247   : > { %1227 = vmatmul.mubr.msk.bf16.gmra.mrb[4].mxu1 %vm547_vm2, %v784_v39  ;;  %v1292_v6 = vpop.eup %1291  ;;  %v676_v21 = vmul.f32 %v1290_v5, %v668_v17 }
 0x248   : > { %v1294_v8 = vpop.eup %1293  ;;  %v678_v18 = vmul.f32 %v1292_v6, %v670_v15 }
 0x249   : > { %v1296_v10 = vpop.eup %1295  ;;  %v679_v30 = vmul.f32 %v1294_v8, %v671_v26 }
 0x24a   : > { %v1298_v12 = vpop.eup %1297  ;;  %v680_v40 = vmul.f32 %v1296_v10, %v672_v38 }
 0x24b   : > { %v1300_v13 = vpop.eup %1299  ;;  %v681_v45 = vmul.f32 %v1298_v12, %v673_v42 }
 0x24c   : > { %v1302_v14 = vpop.eup %1301  ;;  %v682_v62 = vmul.f32 %v1300_v13, %v674_v59 }
 0x24d   : > { %v683_v20 = vmul.f32 %v1302_v14, %v675_v9 }
 0x257   : > { %740 = vperm.xlu1 %1262, %v1288_v4  }
 0x258   : > { %735 = vperm.xlu0 %1261, %v1290_v5  }
 0x25b   : > { %745 = vperm.xlu1 %1262, %v1292_v6  }
 0x25c   : > { %750 = vperm.xlu0 %1261, %v1294_v8  }
 0x25f   : > { %755 = vperm.xlu1 %1262, %v1296_v10  }
 0x260   : > { %760 = vperm.xlu0 %1261, %v1298_v12  }
 0x263   : > { %765 = vperm.xlu1 %1262, %v1300_v13  }
 0x264   : > { %770 = vperm.xlu0 %1261, %v1302_v14  }
 0x2ba   : > { %v692_v19 = vpop.xlane.xlu0 %691 }
 0x2bb   : > { %v710_v23 = vadd.f32 %v692_v19, %v678_v18  ;;  %v686_v24 = vpop.xlane.xlu1 %685 }
 0x2bc   : > { %v708_v27 = vadd.f32 %v686_v24, %v676_v21  ;;  %v731_v24 = vld [vmem:[#allocation4 + $0x30] sm:$0xff] }
 0x2bd   : > { %719 = vst.msk [vmem:[#allocation3 + $0x10] sm:$0xff] %vm343_vm1, %v710_v23 }
 0x2be   : > { %717 = vst.msk [vmem:[#allocation3] sm:$0xff] %vm343_vm1, %v708_v27  ;;  %v729_v27 = vld [vmem:[#allocation4 + $0x20] sm:$0xff] }
 0x2bf   : > { %v695_v32 = vpop.xlane.xlu1 %694 }
 0x2c0   : > { %v711_v47 = vadd.f32 %v695_v32, %v679_v30  ;;  %v732_v30 = vld [vmem:[#allocation4 + $0x38] sm:$0xff]  ;;  %v730_v32 = vld [vmem:[#allocation4 + $0x28] sm:$0xff] }
 0x2c2   : > { %720 = vst.msk [vmem:[#allocation3 + $0x18] sm:$0xff] %vm343_vm1, %v711_v47  ;;  %v689_v49 = vpop.xlane.xlu0 %688 }
 0x2c3   : > { %v709_v50 = vadd.f32 %v689_v49, %v677_v48 }
 0x2c4   : > { %v931_v52 = vld [vmem:[#allocation3 + $0x10] sm:$0xff] }
 0x2c5   : > { %718 = vst.msk [vmem:[#allocation3 + $0x8] sm:$0xff] %vm343_vm1, %v709_v50  ;;  %1303 = vrcp.f32 %v931_v52  ;;  %v929_v53 = vld [vmem:[#allocation3] sm:$0xff] }
 0x2c6   : > { %1305 = vrcp.f32 %v929_v53 }
 0x2c9   : > { %v932_v56 = vld [vmem:[#allocation3 + $0x18] sm:$0xff] }
 0x2ca   : > { %1307 = vrcp.f32 %v932_v56 }
 0x2cb   : > { %v698_v58 = vpop.xlane.xlu0 %697 }
 0x2cc   : > { %v712_v60 = vadd.f32 %v698_v58, %v680_v40  ;;  %v930_v61 = vld [vmem:[#allocation3 + $0x8] sm:$0xff] }
 0x2cd   : > { %1309 = vrcp.f32 %v930_v61 }
 0x2ce   : > { %721 = vst.msk [vmem:[#allocation3 + $0x20] sm:$0xff] %vm343_vm1, %v712_v60 }
 0x2cf   : > { %v1304_v1 = vpop.eup %1303  ;;  %v704_v3 = vpop.xlane.xlu0 %703 }
 0x2d0   : > { %v701_v54 = vpop.xlane.xlu1 %700  ;;  %v714_v11 = vadd.f32 %v704_v3, %v682_v62  ;;  %957 = vperm.xlu1 %1262, %v1304_v1   ;;  %v1306_v51 = vpop.eup %1305 }
 0x2d1   : > { %v713_v16 = vadd.f32 %v701_v54, %v681_v45 }
 0x2d2   : > { %723 = vst.msk [vmem:[#allocation3 + $0x30] sm:$0xff] %vm343_vm1, %v714_v11 }
 0x2d3   : > { %722 = vst.msk [vmem:[#allocation3 + $0x28] sm:$0xff] %vm343_vm1, %v713_v16 }
 0x2d4   : > { %v707_v22 = vpop.xlane.xlu1 %706  ;;  %v1308_v25 = vpop.eup %1307  ;;  %947 = vperm.xlu1 %1262, %v1306_v51  }
 0x2d5   : > { %v715_v55 = vadd.f32 %v707_v22, %v683_v20  ;;  %962 = vperm.xlu0 %1261, %v1308_v25   ;;  %v933_v28 = vld [vmem:[#allocation3 + $0x20] sm:$0xff] }
 0x2d6   : > { %1311 = vrcp.f32 %v933_v28 }
 0x2d7   : > { %724 = vst.msk [vmem:[#allocation3 + $0x38] sm:$0xff] %vm343_vm1, %v715_v55  ;;  %v1310_v29 = vpop.eup %1309  ;;  %v736_v43 = vpop.permute.xlu0 %735 }
 0x2d8   : > { %v741_v41 = vpop.permute.xlu1 %740  ;;  %v773_v5 = vmul.f32 %v736_v43, %v725_v7 }
 0x2d9   : > { %952 = vperm.xlu0 %1261, %v1310_v29   ;;  %v935_v33 = vld [vmem:[#allocation3 + $0x30] sm:$0xff]  ;;  %v774_v13 = vmul.f32 %v741_v41, %v726_v2 }
 0x2da   : > { %v934_v34 = vld [vmem:[#allocation3 + $0x28] sm:$0xff]  ;;  %1313 = vrcp.f32 %v935_v33 }
 0x2db   : > { %1315 = vrcp.f32 %v934_v34  ;;  %v751_v63 = vpop.permute.xlu0 %750 }
 0x2dc   : > { %v746_v46 = vpop.permute.xlu1 %745  ;;  %v776_v8 = vmul.f32 %v751_v63, %v728_v0 }
 0x2dd   : > { %v775_v4 = vmul.f32 %v746_v46, %v727_v44 }
 0x2de   : > { %v936_v35 = vld [vmem:[#allocation3 + $0x38] sm:$0xff] }
 0x2df   : > { %1317 = vrcp.f32 %v936_v35  ;;  %v761_v23 = vpop.permute.xlu0 %760 }
 0x2e0   : > { %v1312_v36 = vpop.eup %1311  ;;  %v756_v21 = vpop.permute.xlu1 %755  ;;  %v778_v38 = vmul.f32 %v761_v23, %v730_v32 }
 0x2e1   : > { %967 = vperm.xlu1 %1262, %v1312_v36   ;;  %v777_v48 = vmul.f32 %v756_v21, %v729_v27 }
 0x2e3   : > { %v771_v31 = vpop.permute.xlu0 %770 }
 0x2e4   : > { %v1314_v57 = vpop.eup %1313  ;;  %v766_v26 = vpop.permute.xlu1 %765  ;;  %v780_v50 = vmul.f32 %v771_v31, %v732_v30 }
 0x2e5   : > { %v1316_v37 = vpop.eup %1315  ;;  %977 = vperm.xlu1 %1262, %v1314_v57   ;;  %v779_v47 = vmul.f32 %v766_v26, %v731_v24 }
 0x2e6   : > { %972 = vperm.xlu0 %1261, %v1316_v37  }
 0x2e9   : > { %v1318_v39 = vpop.eup %1317 }
 0x2ea   : > { %982 = vperm.xlu0 %1261, %v1318_v39  }
 0x30a   : > { %v1224_v6 = vpop.f32.mrb[0].mxu1 }
 0x30b   : > { %v896_v10 = vadd.f32 %v1224_v6, %v775_v4  ;;  %v863_v12 = vpop.f32.mrb[1].mxu1 }
 0x30c   : > { %v894_v14 = vadd.f32 %v863_v12, %v773_v5  ;;  %v1225_v15 = vpop.f32.mrb[2].mxu1 }
 0x30d   : > { %904 = vst.msk [vmem:[#allocation4 + $0x10] sm:$0xff] %vm360_vm0, %v896_v10  ;;  %v897_v17 = vadd.f32 %v1225_v15, %v776_v8  ;;  %v866_v18 = vpop.f32.mrb[3].mxu1 }
 0x30e   : > { %902 = vst.msk [vmem:[#allocation4] sm:$0xff] %vm360_vm0, %v894_v14  ;;  %v895_v19 = vadd.f32 %v866_v18, %v774_v13 }
 0x30f   : > { %905 = vst.msk [vmem:[#allocation4 + $0x18] sm:$0xff] %vm360_vm0, %v897_v17 }
 0x310   : > { %903 = vst.msk [vmem:[#allocation4 + $0x8] sm:$0xff] %vm360_vm0, %v895_v19 }
 0x314   : > { %v923_v60 = vld [vmem:[#allocation4 + $0x10] sm:$0xff] }
 0x315   : > { %v921_v45 = vld [vmem:[#allocation4] sm:$0xff] }
 0x316   : > { %v924_v54 = vld [vmem:[#allocation4 + $0x18] sm:$0xff] }
 0x317   : > { %v922_v20 = vld [vmem:[#allocation4 + $0x8] sm:$0xff] }
 0x31a   : > { %v1228_v49 = vpop.f32.mrb[4].mxu1 }
 0x31b   : > { %v900_v52 = vadd.f32 %v1228_v49, %v779_v47  ;;  %v879_v53 = vpop.f32.mrb[5].mxu1 }
 0x31c   : > { %v898_v56 = vadd.f32 %v879_v53, %v777_v48  ;;  %v1229_v40 = vpop.f32.mrb[6].mxu1 }
 0x31d   : > { %908 = vst.msk [vmem:[#allocation4 + $0x30] sm:$0xff] %vm360_vm0, %v900_v52  ;;  %v901_v58 = vadd.f32 %v1229_v40, %v780_v50  ;;  %v882_v59 = vpop.f32.mrb[7].mxu1 }
 0x31e   : > { %906 = vst.msk [vmem:[#allocation4 + $0x20] sm:$0xff] %vm360_vm0, %v898_v56  ;;  %v899_v42 = vadd.f32 %v882_v59, %v778_v38 }
 0x31f   : > { %909 = vst.msk [vmem:[#allocation4 + $0x38] sm:$0xff] %vm360_vm0, %v901_v58 }
 0x320   : > { %907 = vst.msk [vmem:[#allocation4 + $0x28] sm:$0xff] %vm360_vm0, %v899_v42 }
 0x324   : > { %v927_v28 = vld [vmem:[#allocation4 + $0x30] sm:$0xff] }
 0x325   : > { %v925_v22 = vld [vmem:[#allocation4 + $0x20] sm:$0xff] }
 0x326   : > { %v928_v57 = vld [vmem:[#allocation4 + $0x38] sm:$0xff] }
 0x327   : > { %v926_v33 = vld [vmem:[#allocation4 + $0x28] sm:$0xff] }
 0x34f   : > { %v958_v61 = vpop.permute.xlu1 %957 }
 0x350   : > { %v987_v62 = vmul.f32 %v958_v61, %v923_v60 }
 0x352   : > { %995 = vst.msk [vmem:[%s1648_s26 + $0x10] sm:$0xff] %vm360_vm0, %v987_v62 }
 0x353   : > { %v948_v1 = vpop.permute.xlu1 %947 }
 0x354   : > { %v985_v3 = vmul.f32 %v948_v1, %v921_v45  ;;  %v963_v9 = vpop.permute.xlu0 %962 }
 0x355   : > { %v988_v11 = vmul.f32 %v963_v9, %v924_v54 }
 0x356   : > { %993 = vst.msk [vmem:[%s1648_s26] sm:$0xff] %vm360_vm0, %v985_v3 }
 0x357   : > { %996 = vst.msk [vmem:[%s1648_s26 + $0x18] sm:$0xff] %vm360_vm0, %v988_v11 }
 0x358   : > { %v953_v16 = vpop.permute.xlu0 %952 }
 0x359   : > { %v986_v51 = vmul.f32 %v953_v16, %v922_v20 }
 0x35b   : > { %994 = vst.msk [vmem:[%s1648_s26 + $0x8] sm:$0xff] %vm360_vm0, %v986_v51 }
 0x360   : > { %v968_v25 = vpop.permute.xlu1 %967 }
 0x361   : > { %v989_v55 = vmul.f32 %v968_v25, %v925_v22 }
 0x363   : > { %997 = vst.msk [vmem:[%s1648_s26 + $0x20] sm:$0xff] %vm360_vm0, %v989_v55 }
 0x364   : > { %v978_v29 = vpop.permute.xlu1 %977 }
 0x365   : > { %v973_v34 = vpop.permute.xlu0 %972  ;;  %v991_v35 = vmul.f32 %v978_v29, %v927_v28 }
 0x366   : > { %v990_v36 = vmul.f32 %v973_v34, %v926_v33 }
 0x367   : > { %999 = vst.msk [vmem:[%s1648_s26 + $0x30] sm:$0xff] %vm360_vm0, %v991_v35 }
 0x368   : > { %998 = vst.msk [vmem:[%s1648_s26 + $0x28] sm:$0xff] %vm360_vm0, %v990_v36 }
 0x369   : > { %v983_v37 = vpop.permute.xlu0 %982 }
 0x36a   : > { %v992_v39 = vmul.f32 %v983_v37, %v928_v57 }
 0x36c   : > { %1000 = vst.msk [vmem:[%s1648_s26 + $0x38] sm:$0xff] %vm360_vm0, %v992_v39 }
 0x36d PF: > { %s14_s17 = sadd.s32 1, %s1341_s17   ;;  %s1680_s15 = smov %s1337_s16 }
 0x36e   : > { %p11_p5 = scmp.ge.s32.totalorder %s14_s17, 10   ;;  %s1681_s16 = smov %s1683_s18 }
 0x370   :  { %13 = sbr.rel (!%p11_p5) target bundleno = 2 (0x2), region = 83 }

</bundles_post_ra>
